<compile_context>
chip_gen: v6e
topology: v6e:2x2x1
jax: 0.10.0
libtpu: 0.0.40
codegen_flags: <defaults>
</compile_context>

<pallas_src>
import jax
import jax.numpy as jnp
from jax import lax
from jax.experimental import pallas as pl
from jax.experimental.pallas import tpu as pltpu  # noqa: F401  (TPU backend / memory spaces)


def decoder_kernel(emb_ref, h_ref, enc_ref, wi_ref, wh_ref, bg_ref,
                   wattn_ref, wfc_ref, pred_ref, hnew_ref, a_ref):
    f32 = jnp.float32
    B, _E = emb_ref.shape
    Hd = h_ref.shape[1]
    BS, He2 = enc_ref.shape                 # BS = B*S, rows are batch-major (i = b*S + s)
    S = BS // B

    emb = emb_ref[...]                      # [B, E]   (embedding gathered in glue, dropout = eval identity)
    h = h_ref[...]                          # [B, Hd]
    enc = enc_ref[...]                      # [B*S, 2He]

    # ---------- GRU step: two fused gate matmuls (gate order r|z|n along lanes) ----------
    gi = jnp.dot(emb, wi_ref[...], preferred_element_type=f32) + bg_ref[0:1, :]   # [B, 3Hd]
    gh = jnp.dot(h,   wh_ref[...], preferred_element_type=f32) + bg_ref[1:2, :]   # [B, 3Hd]
    r = jax.nn.sigmoid(gi[:, 0:Hd] + gh[:, 0:Hd])
    z = jax.nn.sigmoid(gi[:, Hd:2 * Hd] + gh[:, Hd:2 * Hd])
    n = jnp.tanh(gi[:, 2 * Hd:3 * Hd] + r * gh[:, 2 * Hd:3 * Hd])
    h_new = (1.0 - z) * n + z * h                                                 # [B, Hd]
    hnew_ref[...] = h_new                     # 1-step GRU => rnn output == new hidden

    # ---------- packed attention parameters ----------
    wah = wattn_ref[0:Hd, :]                          # [Hd, Hd]   hidden part of attn weight
    wae = wattn_ref[Hd:Hd + He2, :]                   # [2He, Hd]  encoder part
    ba = wattn_ref[Hd + He2:Hd + He2 + 1, :]          # [1, Hd]
    v = wattn_ref[Hd + He2 + 1:Hd + He2 + 2, :]       # [1, Hd]

    # ---------- batched attention energy: energy = tanh(enc@wae + (h_new@wah + ba) bcast) ----------
    proj_e = jnp.dot(enc, wae, preferred_element_type=f32)            # [B*S, Hd]  one MXU matmul
    proj_h = jnp.dot(h_new, wah, preferred_element_type=f32) + ba     # [B, Hd]
    # Broadcast proj_h to the flat rows with a tiny one-hot selection matmul
    # (row i belongs to batch i // S; built from 2-D iota, MXU is otherwise idle here).
    ri = lax.broadcasted_iota(jnp.int32, (BS, B), 0)
    cb = lax.broadcasted_iota(jnp.int32, (BS, B), 1)
    sel = ((ri >= cb * S) & (ri < (cb + 1) * S)).astype(f32)          # [B*S, B]
    energy = jnp.tanh(proj_e + jnp.dot(sel, proj_h, preferred_element_type=f32))  # [B*S, Hd]

    # score for every (b, s) in a single op: score[0, i] = v . energy[i]
    score = lax.dot_general(v, energy, (((1,), (1,)), ((), ())),
                            preferred_element_type=f32)               # [1, B*S]

    # ---------- per-batch softmax on a masked [B, B*S] view (lane reductions only) ----------
    rb = lax.broadcasted_iota(jnp.int32, (B, BS), 0)
    ci = lax.broadcasted_iota(jnp.int32, (B, BS), 1)
    grp = (ci >= rb * S) & (ci < (rb + 1) * S)                        # [B, B*S] group mask
    sc = jnp.broadcast_to(score, (B, BS))
    m = jnp.max(jnp.where(grp, sc, -jnp.inf), axis=-1, keepdims=True) # [B, 1] per-batch max
    p = jnp.where(grp, jnp.exp(sc - m), 0.0)                          # [B, B*S]
    denom = jnp.sum(p, axis=-1, keepdims=True)                        # [B, 1]
    a_mat = p * pl.reciprocal(denom, approx=True)                     # [B, B*S], zero off-group

    # attention weights, flattened batch-major (wrapper reshapes to [B, S]); written once.
    a_ref[...] = jnp.sum(a_mat, axis=0, keepdims=True)                # [1, B*S]

    # attended feature for the whole batch in one matmul (mask does the group selection)
    weighted = jnp.dot(a_mat, enc, preferred_element_type=f32)        # [B, 2He]

    # ---------- fc_out: single fused matmul, bias folded via ones column, lane-dense output ----------
    ones = jnp.ones((B, 1), f32)
    xcat = jnp.concatenate([h_new, weighted, ones], axis=-1)          # [B, Hd+2He+1]
    pred_ref[...] = jnp.dot(xcat, wfc_ref[...], preferred_element_type=f32)   # [B, Vpad]


def decoder_forward(params, tokens, hidden, encoder_outputs):
    """tokens: [B] int32; hidden: [B, Hd]; encoder_outputs: [S, B, 2*He] (seq-major)."""
    S, B, He2 = encoder_outputs.shape
    Hd = hidden.shape[1]
    V = params["output_dim"]
    Vpad = params["wfc"].shape[1]

    emb = jnp.take(params["emb_w"], tokens, axis=0)              # embedding gather (glue)
    # TODO(synk): nn.Dropout treated as eval-mode identity (no torch RNG parity).
    # TODO(synk): the (1,0,2) transpose could be removed by emitting batch-first encoder
    # outputs upstream (review item 8); kept here as cheap XLA glue.
    enc_flat = jnp.transpose(encoder_outputs, (1, 0, 2)).reshape(B * S, He2)

    out_shapes = (jax.ShapeDtypeStruct((B, Vpad), jnp.float32),   # pred (lane-padded)
                  jax.ShapeDtypeStruct((B, Hd), jnp.float32),     # new hidden
                  jax.ShapeDtypeStruct((1, B * S), jnp.float32))  # attention weights (flat)

    pred_pad, h_new, a_flat = pl.pallas_call(
        decoder_kernel,
        out_shape=out_shapes,
    )(emb, hidden, enc_flat,
      params["wi"], params["wh"], params["bg"],
      params["wattn"], params["wfc"])

    prediction = pred_pad[:, :V][None, :, :]     # [1, B, V]
    a = a_flat.reshape(B, S)                     # [B, S]
    return prediction, h_new, a


def init_params(key, output_dim, emb_dim, enc_hid_dim, dec_hid_dim):
    """Deterministic synthetic parameters (same shapes as the PyTorch module), pre-packed."""
    ks = jax.random.split(key, 10)

    def u(k, shape, scale=0.1):
        return jax.random.uniform(k, shape, jnp.float32, -scale, scale)

    V, Hd, He2 = output_dim, dec_hid_dim, 2 * enc_hid_dim
    emb_w  = u(ks[0], (V, emb_dim))
    w_ih   = u(ks[1], (3 * Hd, emb_dim))          # nn.GRU weight_ih_l0 (gate order r,z,n)
    w_hh   = u(ks[2], (3 * Hd, Hd))               # nn.GRU weight_hh_l0
    b_ih   = u(ks[3], (3 * Hd,))
    b_hh   = u(ks[4], (3 * Hd,))
    attn_w = u(ks[5], (Hd, Hd + He2))             # attention.attn: Linear(Hd+2He -> Hd)
    attn_b = u(ks[6], (Hd,))
    v_w    = u(ks[7], (1, Hd))                    # attention.v: Linear(Hd -> 1, no bias)
    fc_w   = u(ks[8], (V, Hd + He2))              # fc_out: Linear(Hd+2He -> V)
    fc_b   = u(ks[9], (V,))

    Vpad = ((V + 127) // 128) * 128               # lane-dense prediction stores

    params = dict(
        output_dim=V,
        emb_w=emb_w,
        wi=w_ih.T,                                # [E, 3Hd]  fused GRU input weights
        wh=w_hh.T,                                # [Hd, 3Hd] fused GRU hidden weights
        bg=jnp.stack([b_ih, b_hh], axis=0),       # [2, 3Hd]  (row0 = b_ih, row1 = b_hh)
        # attention pack: [wah ; wae ; ba ; v]  (cat order in attention: hidden, enc_outputs)
        wattn=jnp.concatenate([attn_w[:, :Hd].T,          # [Hd, Hd]
                               attn_w[:, Hd:].T,          # [2He, Hd]
                               attn_b[None, :],           # [1, Hd]
                               v_w], axis=0),             # [1, Hd]  -> [Hd+2He+2, Hd]
        # fc pack: [wfo ; wfa ; bf], lane-padded  (cat order in fc_out: rnn_output, attended)
        wfc=jnp.pad(jnp.concatenate([fc_w[:, :Hd].T,      # [Hd, V]
                                     fc_w[:, Hd:].T,      # [2He, V]
                                     fc_b[None, :]],      # [1, V]   -> [Hd+2He+1, V]
                                    axis=0),
                    ((0, 0), (0, Vpad - V))),
    )
    raw = dict(emb_w=emb_w, w_ih=w_ih, w_hh=w_hh, b_ih=b_ih, b_hh=b_hh,
               attn_w=attn_w, attn_b=attn_b, v_w=v_w, fc_w=fc_w, fc_b=fc_b)
    return params, raw


def reference_forward(raw, tokens, hidden, encoder_outputs, Hd):
    """Pure-JAX mirror of the PyTorch forward (eval-mode dropout)."""
    emb = raw["emb_w"][tokens]
    gi = emb @ raw["w_ih"].T + raw["b_ih"]
    gh = hidden @ raw["w_hh"].T + raw["b_hh"]
    r = jax.nn.sigmoid(gi[:, :Hd] + gh[:, :Hd])
    z = jax.nn.sigmoid(gi[:, Hd:2 * Hd] + gh[:, Hd:2 * Hd])
    n = jnp.tanh(gi[:, 2 * Hd:] + r * gh[:, 2 * Hd:])
    h_new = (1 - z) * n + z * hidden
    enc_bf = jnp.transpose(encoder_outputs, (1, 0, 2))
    S = enc_bf.shape[1]
    hid_rep = jnp.repeat(h_new[:, None, :], S, axis=1)
    energy = jnp.tanh(jnp.concatenate([hid_rep, enc_bf], axis=2) @ raw["attn_w"].T
                      + raw["attn_b"])
    score = (energy @ raw["v_w"].T)[:, :, 0]
    a = jax.nn.softmax(score, axis=1)
    weighted = jnp.einsum('bs,bse->be', a, enc_bf)
    pred = jnp.concatenate([h_new, weighted], axis=1) @ raw["fc_w"].T + raw["fc_b"]
    return pred[None], h_new, a


if __name__ == "__main__":
    V, E, He, Hd = 50, 16, 32, 32     # output_dim, emb_dim, enc_hid_dim, dec_hid_dim
    B, S = 2, 8                       # batch, source length

    key = jax.random.PRNGKey(0)
    kp, kt, kh, ke = jax.random.split(key, 4)
    params, raw = init_params(kp, V, E, He, Hd)
    tokens = jax.random.randint(kt, (B,), 0, V, dtype=jnp.int32)
    hidden = jax.random.normal(kh, (B, Hd), jnp.float32)
    enc_out = jax.random.normal(ke, (S, B, 2 * He), jnp.float32)

    prediction, h_new, a = decoder_forward(params, tokens, hidden, enc_out)
    jax.block_until_ready((prediction, h_new, a))

    rp, rh, ra = reference_forward(raw, tokens, hidden, enc_out, Hd)
    assert prediction.shape == (1, B, V) and h_new.shape == (B, Hd) and a.shape == (B, S)
    assert jnp.allclose(h_new, rh, atol=1e-4, rtol=1e-4)
    # pred / a go through the EUP approx-reciprocal softmax denominator -> slightly looser tol.
    assert jnp.allclose(prediction, rp, atol=5e-3, rtol=5e-3)
    assert jnp.allclose(a, ra, atol=5e-3, rtol=5e-3)
    print("KERNEL_OK")
</pallas_src>

<mosaic_0001>
module attributes {stable_mosaic.version = 11 : i64} {
  func.func @decoder_kernel(%arg0: memref<2x16xf32, #tpu.memory_space<vmem>>, %arg1: memref<2x32xf32, #tpu.memory_space<vmem>>, %arg2: memref<16x64xf32, #tpu.memory_space<vmem>>, %arg3: memref<16x96xf32, #tpu.memory_space<vmem>>, %arg4: memref<32x96xf32, #tpu.memory_space<vmem>>, %arg5: memref<2x96xf32, #tpu.memory_space<vmem>>, %arg6: memref<98x32xf32, #tpu.memory_space<vmem>>, %arg7: memref<97x128xf32, #tpu.memory_space<vmem>>, %arg8: memref<2x128xf32, #tpu.memory_space<vmem>>, %arg9: memref<2x32xf32, #tpu.memory_space<vmem>>, %arg10: memref<1x16xf32, #tpu.memory_space<vmem>>) attributes {dimension_semantics = [], scalar_prefetch = 0 : i64, scratch_operands = 0 : i64, tpu.core_type = #tpu.core_type<tc>} {
    %c0 = arith.constant 0 : index
    %c0_0 = arith.constant 0 : index
    %0 = vector.load %arg0[%c0, %c0_0] : memref<2x16xf32, #tpu.memory_space<vmem>>, vector<2x16xf32>
    %c0_1 = arith.constant 0 : index
    %c0_2 = arith.constant 0 : index
    %1 = vector.load %arg1[%c0_1, %c0_2] : memref<2x32xf32, #tpu.memory_space<vmem>>, vector<2x32xf32>
    %c0_3 = arith.constant 0 : index
    %c0_4 = arith.constant 0 : index
    %2 = vector.load %arg2[%c0_3, %c0_4] : memref<16x64xf32, #tpu.memory_space<vmem>>, vector<16x64xf32>
    %c0_5 = arith.constant 0 : index
    %c0_6 = arith.constant 0 : index
    %3 = vector.load %arg3[%c0_5, %c0_6] : memref<16x96xf32, #tpu.memory_space<vmem>>, vector<16x96xf32>
    %cst = arith.constant dense<0.000000e+00> : vector<2x96xf32>
    %4 = tpu.matmul %0, %3, %cst {dimension_numbers = #tpu.dot_dimension_numbers<[1], [0], [0], [1], [0, 0, 1, 1], [], []>} : vector<2x16xf32>, vector<16x96xf32>, vector<2x96xf32> -> vector<2x96xf32>
    %c0_7 = arith.constant 0 : index
    %c0_8 = arith.constant 0 : index
    %5 = vector.load %arg5[%c0_7, %c0_8] : memref<2x96xf32, #tpu.memory_space<vmem>>, vector<1x96xf32>
    %6 = vector.broadcast %5 : vector<1x96xf32> to vector<2x96xf32>
    %7 = arith.addf %4, %6 : vector<2x96xf32>
    %c0_9 = arith.constant 0 : index
    %c0_10 = arith.constant 0 : index
    %8 = vector.load %arg4[%c0_9, %c0_10] : memref<32x96xf32, #tpu.memory_space<vmem>>, vector<32x96xf32>
    %cst_11 = arith.constant dense<0.000000e+00> : vector<2x96xf32>
    %9 = tpu.matmul %1, %8, %cst_11 {dimension_numbers = #tpu.dot_dimension_numbers<[1], [0], [0], [1], [0, 0, 1, 1], [], []>} : vector<2x32xf32>, vector<32x96xf32>, vector<2x96xf32> -> vector<2x96xf32>
    %c1 = arith.constant 1 : index
    %c0_12 = arith.constant 0 : index
    %10 = vector.load %arg5[%c1, %c0_12] : memref<2x96xf32, #tpu.memory_space<vmem>>, vector<1x96xf32>
    %11 = vector.broadcast %10 : vector<1x96xf32> to vector<2x96xf32>
    %12 = arith.addf %9, %11 : vector<2x96xf32>
    %13 = vector.extract_strided_slice %7 {offsets = [0, 0], sizes = [2, 32], strides = [1, 1]} : vector<2x96xf32> to vector<2x32xf32>
    %14 = vector.extract_strided_slice %12 {offsets = [0, 0], sizes = [2, 32], strides = [1, 1]} : vector<2x96xf32> to vector<2x32xf32>
    %15 = arith.addf %13, %14 : vector<2x32xf32>
    %16 = arith.negf %15 : vector<2x32xf32>
    %17 = math.exp %16 : vector<2x32xf32>
    %cst_13 = arith.constant 1.000000e+00 : f32
    %18 = vector.broadcast %cst_13 : f32 to vector<2x32xf32>
    %19 = arith.addf %18, %17 : vector<2x32xf32>
    %20 = arith.divf %18, %19 : vector<2x32xf32>
    %21 = vector.extract_strided_slice %7 {offsets = [0, 32], sizes = [2, 32], strides = [1, 1]} : vector<2x96xf32> to vector<2x32xf32>
    %22 = vector.extract_strided_slice %12 {offsets = [0, 32], sizes = [2, 32], strides = [1, 1]} : vector<2x96xf32> to vector<2x32xf32>
    %23 = arith.addf %21, %22 : vector<2x32xf32>
    %24 = arith.negf %23 : vector<2x32xf32>
    %25 = math.exp %24 : vector<2x32xf32>
    %cst_14 = arith.constant 1.000000e+00 : f32
    %26 = vector.broadcast %cst_14 : f32 to vector<2x32xf32>
    %27 = arith.addf %26, %25 : vector<2x32xf32>
    %28 = arith.divf %26, %27 : vector<2x32xf32>
    %29 = vector.extract_strided_slice %7 {offsets = [0, 64], sizes = [2, 32], strides = [1, 1]} : vector<2x96xf32> to vector<2x32xf32>
    %30 = vector.extract_strided_slice %12 {offsets = [0, 64], sizes = [2, 32], strides = [1, 1]} : vector<2x96xf32> to vector<2x32xf32>
    %31 = arith.mulf %20, %30 : vector<2x32xf32>
    %32 = arith.addf %29, %31 : vector<2x32xf32>
    %33 = math.tanh %32 : vector<2x32xf32>
    %cst_15 = arith.constant 1.000000e+00 : f32
    %34 = vector.broadcast %cst_15 : f32 to vector<2x32xf32>
    %35 = arith.subf %34, %28 : vector<2x32xf32>
    %36 = arith.mulf %35, %33 : vector<2x32xf32>
    %37 = arith.mulf %28, %1 : vector<2x32xf32>
    %38 = arith.addf %36, %37 : vector<2x32xf32>
    %c0_16 = arith.constant 0 : index
    %c0_17 = arith.constant 0 : index
    %39 = vector.load %arg9[%c0_16, %c0_17] : memref<2x32xf32, #tpu.memory_space<vmem>>, vector<2x32xf32>
    tpu.vector_store %arg9[%c0_16, %c0_17], %38 {strides = array<i32>} : memref<2x32xf32, #tpu.memory_space<vmem>>, vector<2x32xf32>,
    %c0_18 = arith.constant 0 : index
    %c0_19 = arith.constant 0 : index
    %40 = vector.load %arg6[%c0_18, %c0_19] : memref<98x32xf32, #tpu.memory_space<vmem>>, vector<32x32xf32>
    %c32 = arith.constant 32 : index
    %c0_20 = arith.constant 0 : index
    %41 = vector.load %arg6[%c32, %c0_20] : memref<98x32xf32, #tpu.memory_space<vmem>>, vector<64x32xf32>
    %c96 = arith.constant 96 : index
    %c0_21 = arith.constant 0 : index
    %42 = vector.load %arg6[%c96, %c0_21] : memref<98x32xf32, #tpu.memory_space<vmem>>, vector<1x32xf32>
    %c97 = arith.constant 97 : index
    %c0_22 = arith.constant 0 : index
    %43 = vector.load %arg6[%c97, %c0_22] : memref<98x32xf32, #tpu.memory_space<vmem>>, vector<1x32xf32>
    %cst_23 = arith.constant dense<0.000000e+00> : vector<16x32xf32>
    %44 = tpu.matmul %2, %41, %cst_23 {dimension_numbers = #tpu.dot_dimension_numbers<[1], [0], [0], [1], [0, 0, 1, 1], [], []>} : vector<16x64xf32>, vector<64x32xf32>, vector<16x32xf32> -> vector<16x32xf32>
    %cst_24 = arith.constant dense<0.000000e+00> : vector<2x32xf32>
    %45 = tpu.matmul %38, %40, %cst_24 {dimension_numbers = #tpu.dot_dimension_numbers<[1], [0], [0], [1], [0, 0, 1, 1], [], []>} : vector<2x32xf32>, vector<32x32xf32>, vector<2x32xf32> -> vector<2x32xf32>
    %46 = vector.broadcast %42 : vector<1x32xf32> to vector<2x32xf32>
    %47 = arith.addf %45, %46 : vector<2x32xf32>
    %48 = tpu.iota {dimensions = array<i32: 0>} : vector<16x2xi32>
    %49 = tpu.iota {dimensions = array<i32: 1>} : vector<16x2xi32>
    %c8_i32 = arith.constant 8 : i32
    %50 = vector.broadcast %c8_i32 : i32 to vector<16x2xi32>
    %51 = arith.muli %49, %50 : vector<16x2xi32>
    %52 = arith.cmpi sge, %48, %51 : vector<16x2xi32>
    %c1_i32 = arith.constant 1 : i32
    %53 = vector.broadcast %c1_i32 : i32 to vector<16x2xi32>
    %54 = arith.addi %49, %53 : vector<16x2xi32>
    %c8_i32_25 = arith.constant 8 : i32
    %55 = vector.broadcast %c8_i32_25 : i32 to vector<16x2xi32>
    %56 = arith.muli %54, %55 : vector<16x2xi32>
    %57 = arith.cmpi slt, %48, %56 : vector<16x2xi32>
    %58 = arith.andi %52, %57 : vector<16x2xi1>
    %59 = arith.extui %58 : vector<16x2xi1> to vector<16x2xi32>
    %60 = arith.sitofp %59 : vector<16x2xi32> to vector<16x2xf32>
    %cst_26 = arith.constant dense<0.000000e+00> : vector<16x32xf32>
    %61 = tpu.matmul %60, %47, %cst_26 {dimension_numbers = #tpu.dot_dimension_numbers<[1], [0], [0], [1], [0, 0, 1, 1], [], []>} : vector<16x2xf32>, vector<2x32xf32>, vector<16x32xf32> -> vector<16x32xf32>
    %62 = arith.addf %44, %61 : vector<16x32xf32>
    %63 = math.tanh %62 : vector<16x32xf32>
    %cst_27 = arith.constant dense<0.000000e+00> : vector<1x16xf32>
    %64 = tpu.matmul %43, %63, %cst_27 {dimension_numbers = #tpu.dot_dimension_numbers<[1], [1], [0], [0], [0, 0, 1, 0], [], []>} : vector<1x32xf32>, vector<16x32xf32>, vector<1x16xf32> -> vector<1x16xf32>
    %65 = tpu.iota {dimensions = array<i32: 0>} : vector<2x16xi32>
    %66 = tpu.iota {dimensions = array<i32: 1>} : vector<2x16xi32>
    %c8_i32_28 = arith.constant 8 : i32
    %67 = vector.broadcast %c8_i32_28 : i32 to vector<2x16xi32>
    %68 = arith.muli %65, %67 : vector<2x16xi32>
    %69 = arith.cmpi sge, %66, %68 : vector<2x16xi32>
    %c1_i32_29 = arith.constant 1 : i32
    %70 = vector.broadcast %c1_i32_29 : i32 to vector<2x16xi32>
    %71 = arith.addi %65, %70 : vector<2x16xi32>
    %c8_i32_30 = arith.constant 8 : i32
    %72 = vector.broadcast %c8_i32_30 : i32 to vector<2x16xi32>
    %73 = arith.muli %71, %72 : vector<2x16xi32>
    %74 = arith.cmpi slt, %66, %73 : vector<2x16xi32>
    %75 = arith.andi %69, %74 : vector<2x16xi1>
    %76 = vector.shape_cast %64 : vector<1x16xf32> to vector<1x16xf32>
    %77 = vector.broadcast %76 : vector<1x16xf32> to vector<2x16xf32>
    %cst_31 = arith.constant 0xFF800000 : f32
    %78 = vector.broadcast %cst_31 : f32 to vector<2x16xf32>
    %79 = arith.select %75, %77, %78 : vector<2x16xi1>, vector<2x16xf32>
    %cst_32 = arith.constant dense<0xFF800000> : vector<2xf32>
    %80 = vector.multi_reduction <maximumf>, %79, %cst_32 [1] : vector<2x16xf32> to vector<2xf32>
    %81 = vector.shape_cast %80 : vector<2xf32> to vector<2x1xf32>
    %82 = vector.broadcast %81 : vector<2x1xf32> to vector<2x16xf32>
    %83 = arith.subf %77, %82 : vector<2x16xf32>
    %84 = math.exp %83 : vector<2x16xf32>
    %cst_33 = arith.constant 0.000000e+00 : f32
    %85 = vector.broadcast %cst_33 : f32 to vector<2x16xf32>
    %86 = arith.select %75, %84, %85 : vector<2x16xi1>, vector<2x16xf32>
    %cst_34 = arith.constant dense<0.000000e+00> : vector<2xf32>
    %87 = vector.multi_reduction <add>, %86, %cst_34 [1] : vector<2x16xf32> to vector<2xf32>
    %88 = vector.shape_cast %87 : vector<2xf32> to vector<2x1xf32>
    %89 = tpu.reciprocal %88 {approx = true} : vector<2x1xf32> -> vector<2x1xf32>
    %90 = vector.broadcast %89 : vector<2x1xf32> to vector<2x16xf32>
    %91 = arith.mulf %86, %90 : vector<2x16xf32>
    %cst_35 = arith.constant dense<0.000000e+00> : vector<16xf32>
    %92 = vector.multi_reduction <add>, %91, %cst_35 [0] : vector<2x16xf32> to vector<16xf32>
    %93 = vector.shape_cast %92 : vector<16xf32> to vector<1x16xf32>
    %c0_36 = arith.constant 0 : index
    %c0_37 = arith.constant 0 : index
    %94 = vector.load %arg10[%c0_36, %c0_37] : memref<1x16xf32, #tpu.memory_space<vmem>>, vector<1x16xf32>
    tpu.vector_store %arg10[%c0_36, %c0_37], %93 {strides = array<i32>} : memref<1x16xf32, #tpu.memory_space<vmem>>, vector<1x16xf32>,
    %cst_38 = arith.constant dense<0.000000e+00> : vector<2x64xf32>
    %95 = tpu.matmul %91, %2, %cst_38 {dimension_numbers = #tpu.dot_dimension_numbers<[1], [0], [0], [1], [0, 0, 1, 1], [], []>} : vector<2x16xf32>, vector<16x64xf32>, vector<2x64xf32> -> vector<2x64xf32>
    %cst_39 = arith.constant 1.000000e+00 : f32
    %96 = vector.broadcast %cst_39 : f32 to vector<2x1xf32>
    %97 = tpu.concatenate %38, %95, %96 in 1 : vector<2x32xf32>, vector<2x64xf32>, vector<2x1xf32> -> vector<2x97xf32>
    %c0_40 = arith.constant 0 : index
    %c0_41 = arith.constant 0 : index
    %98 = vector.load %arg7[%c0_40, %c0_41] : memref<97x128xf32, #tpu.memory_space<vmem>>, vector<97x128xf32>
    %cst_42 = arith.constant dense<0.000000e+00> : vector<2x128xf32>
    %99 = tpu.matmul %97, %98, %cst_42 {dimension_numbers = #tpu.dot_dimension_numbers<[1], [0], [0], [1], [0, 0, 1, 1], [], []>} : vector<2x97xf32>, vector<97x128xf32>, vector<2x128xf32> -> vector<2x128xf32>
    %c0_43 = arith.constant 0 : index
    %c0_44 = arith.constant 0 : index
    %100 = vector.load %arg8[%c0_43, %c0_44] : memref<2x128xf32, #tpu.memory_space<vmem>>, vector<2x128xf32>
    tpu.vector_store %arg8[%c0_43, %c0_44], %99 {strides = array<i32>} : memref<2x128xf32, #tpu.memory_space<vmem>>, vector<2x128xf32>,
    return
  }
}

</mosaic_0001>

<bundles_post_ra>
// kernel: tpu_custom_call.1
= control target key start
LH: loop header
LB: loop body
LE: loop exit
PB: predicated region body
PF: predicated region fallthrough
CT: control target
= control target key end

     0   :  { %16 = vsyncpa [#allocation3], 0  ;;  %s1418_s0 = inlined_call_operand.vmem [shape: f32[2,16], index: 0, kind: input, shape index: {}]   ;;  %s1419_s1 = inlined_call_operand.vmem [shape: f32[2,32], index: 1, kind: input, shape index: {}]   ;;  %s1420_s2 = inlined_call_operand.hbm [shape: f32[16,64], index: 2, kind: input, shape index: {}]   ;;  %s1421_s3 = inlined_call_operand.hbm [shape: f32[16,96], index: 3, kind: input, shape index: {}]   ;;  %s1422_s4 = inlined_call_operand.vmem [shape: f32[32,96], index: 4, kind: input, shape index: {}]   ;;  %s1423_s5 = inlined_call_operand.vmem [shape: f32[2,96], index: 5, kind: input, shape index: {}]   ;;  %s1424_s6 = inlined_call_operand.vmem [shape: f32[98,32], index: 6, kind: input, shape index: {}]   ;;  %s1425_s7 = inlined_call_operand.vmem [shape: f32[97,128], index: 7, kind: input, shape index: {}]   ;;  %s1426_s8 = inlined_call_operand.hbm [shape: f32[2,128], index: 8, kind: output, shape index: {0}]   ;;  %s1427_s9 = inlined_call_operand.hbm [shape: f32[2,32], index: 9, kind: output, shape index: {1}]   ;;  %s1428_s10 = inlined_call_operand.hbm [shape: f32[1,16], index: 10, kind: output, shape index: {2}]  }
   0x1   :  { %17 = vsyncpa [#allocation6], 0 }
   0x2   :  { %18 = vsyncpa [#allocation4], 0 }
   0x3   :  { %19 = vsyncpa [#allocation9], 0  ;;  %s1166_s13 = smov [#allocation2]  }
   0x4   :  { %s29_s14 = sshll.u32 %s1166_s13, 4  ;;  %s30_s14 = int_to_ptr.vmem [resolvable:$true] %s29_s14 }
   0x5   :  { %s1066_s15 = scalar_lea.vmem %s30_s14, 256  ;;  %p1071_p1 = scmp.lt.s32.totalorder %s30_s14, %s30_s14 }
   0x6   :  { %p1067_p0 = scmp.ne.s32.totalorder %s30_s14, %s1066_s15  ;;  %p1072_p2 = scmp.lt.s32.totalorder %s1066_s15, %s1066_s15 }
   0x8   :  { %p1073_p3 = por %p1072_p2, %p1071_p1 }
   0xa   :  { %p1074_p4 = pnand %p1073_p3, %p1067_p0 }
   0xc   :  { %1077 = shalt.err (!%p1074_p4)
}
   0xd   :  { %s1167_s16 = smov 128   ;;  %s1168_s17 = smov 8  }
   0xe   :  { %35 = dma.hbm_to_vmem [thread:$0]  %s1420_s2, 256, %s30_s14, [#allocation3], %s1167_s16, %s1167_s16, %s1168_s17  }
   0xf   :  { %s1169_s20 = smov [#allocation5]  }
  0x10   :  { %s41_s21 = sshll.u32 %s1169_s20, 4  ;;  %s42_s21 = int_to_ptr.vmem [resolvable:$true] %s41_s21 }
  0x11   :  { %s1086_s22 = scalar_lea.vmem %s42_s21, 256  ;;  %p1091_p6 = scmp.lt.s32.totalorder %s42_s21, %s42_s21 }
  0x12   :  { %p1087_p5 = scmp.ne.s32.totalorder %s42_s21, %s1086_s22  ;;  %p1092_p7 = scmp.lt.s32.totalorder %s1086_s22, %s1086_s22 }
  0x14   :  { %p1093_p8 = por %p1092_p7, %p1091_p6 }
  0x16   :  { %p1094_p9 = pnand %p1093_p8, %p1087_p5 }
  0x18   :  { %1097 = shalt.err (!%p1094_p9)
}
  0x19   :  { %47 = dma.hbm_to_vmem [thread:$0]  %s1421_s3, 256, %s42_s21, [#allocation6], %s1167_s16, %s1167_s16, %s1168_s17  }
  0x1a   :  { %1158 = dma.done.wait [#allocation3], 256  }
  0x1b   :  { %1159 = vsyncadd [#allocation3], 4294967040 }
  0x1c   :  { %1160 = dma.done.wait [#allocation6], 256  }
  0x1d   :  { %1161 = vsyncadd [#allocation6], 4294967040  ;;  %v1170_v0 = vmov 0.0   ;;  %vm1171_vm0 = vmmov 0   ;;  %v67_v1 = vld [vmem:[#allocation5 + $0x8] sm:$0xff]  ;;  %v66_v2 = vld [vmem:[#allocation5] sm:$0xff]  ;;  %v355_v45 = vlaneseq }
  0x1e   :  { %936 = vmatprep.subr.mxu0 %v1170_v0  ;;  %940 = vmatprep.mubr.msk.f32.mxu0 %vm1171_vm0, %v1170_v0  ;;  %v62_v3 = vld [vmem:[%s1418_s0] sm:$0x3]  ;;  %vm73_vm1 = vcmask 130048   ;;  %v150_v4 = vld [vmem:[%s1422_s4 + $0x18] sm:$0xff]  ;;  %v149_v5 = vld [vmem:[%s1422_s4 + $0x10] sm:$0xff]  ;;  %vm156_vm2 = vcmask 261120  }
  0x1f   :  { %937 = vmatpush3.msra.mxu0 %v67_v1  ;;  %v148_v6 = vld [vmem:[%s1422_s4 + $0x8] sm:$0xff]  ;;  %v147_v7 = vld [vmem:[%s1422_s4] sm:$0xff]  ;;  %v268_v26 = vld [vmem:[%s1424_s6 + $0x18] sm:$0xff]  ;;  %s1173_s24 = smov 96   ;;  %s1174_s2 = smov 32   ;;  %vm263_vm3 = vcmask 254976  }
  0x20   :  { %938 = vmatprep.subr.mxu0 %v1170_v0  ;;  %v63_v8 = vld [vmem:[%s1419_s1] sm:$0x3]  ;;  %s1172_s1 = smov 64   ;;  %v267_v27 = vld [vmem:[%s1424_s6 + $0x10] sm:$0xff]  ;;  %v266_v28 = vld [vmem:[%s1424_s6 + $0x8] sm:$0xff]  ;;  %v359_v46 = vand.u32 127, %v355_v45 }
  0x21   :  { %939 = vmatpush3.msra.mxu0 %v66_v2  ;;  %v872_v11 = vld [vmem:[%s1423_s5 + $0x1] ss:$0 sm:$0xff]  ;;  %v870_v15 = vld [vmem:[%s1423_s5] ss:$0 sm:$0xff]  ;;  %v276_v31 = vld [vmem:[%s1424_s6 + $0x58] sm:$0xff]  ;;  %v356_v48 = vshrl.u32 %v355_v45, 7 }
  0x22   :  { %941 = vmatmul.mubr.msk.f32.vlgmr.msra.gmra.mxu0 %vm73_vm1, %v62_v3  ;;  %943 = vmatprep.subr.mxu0 %v1170_v0  ;;  %v265_v30 = vld [vmem:[%s1424_s6] sm:$0xff]  ;;  %v275_v39 = vld [vmem:[%s1424_s6 + $0x50] sm:$0xff]  ;;  %v274_v40 = vld [vmem:[%s1424_s6 + $0x48] sm:$0xff]  ;;  %v363_v47 = vadd.s32 1, %v359_v46  ;;  %v360_v49 = vmul.u32 8, %v359_v46  ;;  %vm459_vm4 = vcmask 523264  }
  0x23   :  { %944 = vmatpush3.msra.mxu0 %v150_v4  ;;  %951 = vmatprep.mubr.msk.f32.mxu0 %vm1171_vm0, %v1170_v0  ;;  %v273_v41 = vld [vmem:[%s1424_s6 + $0x40] sm:$0xff]  ;;  %v272_v42 = vld [vmem:[%s1424_s6 + $0x38] sm:$0xff]  ;;  %v271_v43 = vld [vmem:[%s1424_s6 + $0x30] sm:$0xff]  ;;  %v357_v52 = vadd.s32 8, %v356_v48  ;;  %vm373_vm10 = vcmask 15360   ;;  %vm380_vm12 = vcmask 1041408  }
  0x24   :  { %945 = vmatprep.subr.mxu0 %v1170_v0  ;;  %v270_v44 = vld [vmem:[%s1424_s6 + $0x28] sm:$0xff]  ;;  %v364_v50 = vmul.u32 8, %v363_v47  ;;  %v269_v51 = vld [vmem:[%s1424_s6 + $0x20] sm:$0xff]  ;;  %vm361_vm5 = vcmp.ge.s32.totalorder %v356_v48, %v360_v49 }
  0x25   :  { %946 = vmatpush3.msra.mxu0 %v149_v5  ;;  %v64_v53 = vld [vmem:[#allocation2] sm:$0xff]  ;;  %v65_v54 = vld [vmem:[#allocation2 + $0x8] sm:$0xff]  ;;  %vm362_vm8 = vcmp.ge.s32.totalorder %v357_v52, %v360_v49 }
  0x26   :  { %947 = vmatprep.subr.mxu0 %v1170_v0  ;;  %vm365_vm6 = vcmp.lt.s32.totalorder %v356_v48, %v364_v50  ;;  %vm366_vm9 = vcmp.lt.s32.totalorder %v357_v52, %v364_v50  ;;  %v875_v56 = vld [vmem:[%s1424_s6 + $0x60] ss:$0 sm:$0xff]  ;;  %v736_v45 = vld [vmem:[%s1425_s7 + $0x8] sm:$0xff] }
  0x27   :  { %948 = vmatpush3.msra.mxu0 %v148_v6  ;;  %vm367_vm7 = vmand %vm361_vm5, %vm365_vm6  ;;  %v278_v6 = vld [vmem:[%s1424_s6 + $0x61] sm:$0x1]  ;;  %vm752_vm5 = vcmask 1040384   ;;  %s1175_s6 = smov [#allocation8]  }
  0x28   :  { %949 = vmatprep.subr.mxu0 %v1170_v0  ;;  %v877_v55 = vsel %vm367_vm7, 1.0, %v1170_v0  ;;  %vm368_vm11 = vmand %vm362_vm8, %vm366_vm9  ;;  %s843_s20 = sshll.u32 %s1175_s6, 4  ;;  %s844_s20 = int_to_ptr.vmem [resolvable:$true] %s843_s20 }
  0x29   :  { %950 = vmatpush3.msra.mxu0 %v147_v7  ;;  %967 = vmatprep.mubr.msk.f32.mxu1 %vm373_vm10, %v877_v55  ;;  %v878_v60 = vsel %vm368_vm11, 1.0, %v1170_v0  ;;  %v624_v7 = vadd.s32 1, %v356_v48  ;;  %s1098_s21 = scalar_lea.vmem %s844_s20, 32  ;;  %p1103_p11 = scmp.lt.s32.totalorder %s844_s20, %s844_s20 }
  0x2a   :  { %952 = vmatmul.mubr.msk.f32.vlgmr.msra.gmra.mxu0 %vm156_vm2, %v63_v8  ;;  %954 = vmatprep.subr.mxu0 %v1170_v0  ;;  %p1099_p10 = scmp.ne.s32.totalorder %s844_s20, %s1098_s21  ;;  %p1104_p12 = scmp.lt.s32.totalorder %s1098_s21, %s1098_s21 }
  0x2b   :  { %962 = vmatprep.mubr.msk.f32.mxu0 %vm1171_vm0, %v1170_v0  ;;  %955 = vmatpush3.msra.mxu0 %v268_v26 }
  0x2c   :  { %956 = vmatprep.subr.mxu0 %v1170_v0  ;;  %p1105_p13 = por %p1104_p12, %p1103_p11 }
  0x2d   :  { %957 = vmatpush3.msra.mxu0 %v267_v27 }
  0x2e   :  { %958 = vmatprep.subr.mxu0 %v1170_v0  ;;  %p1106_p0 = pnand %p1105_p13, %p1099_p10 }
  0x2f   :  { %959 = vmatpush3.msra.mxu0 %v266_v28 }
  0x30   :  { %960 = vmatprep.subr.mxu0 %v1170_v0 }
  0x31   :  { %961 = vmatpush3.msra.mxu0 %v265_v30 }
  0x32   :  { %970 = vmatprep.subr.mxu0 %v276_v31 }
  0xe2   :  { %v143_v9 = vpop.f32.mrf.mxu0 }
  0xe3   :  { %v144_v16 = vadd.f32 %v870_v15, %v143_v9  ;;  %v625_v9 = vmul.u32 8, %v624_v7 }
  0xe4   :  { %v942_v10 = vpop.f32.mrf.mxu0 }
  0xe5   :  { %v630_v10 = vsub.s32 0, %v356_v48  ;;  %vm626_vm14 = vcmp.lt.s32.totalorder %v359_v46, %v625_v9 }
  0xea   :  { %v226_v12 = vpop.f32.mrf.mxu0 }
  0xeb   :  { %v227_v13 = vadd.f32 %v872_v11, %v226_v12 }
  0xec   :  { %v953_v14 = vpop.f32.mrf.mxu0 }
  0xed   :  { %238 = vrot.lane.b32.xlu0 %v227_v13, %s1172_s1  ;;  %v230_v17 = vadd.f32 %v227_v13, %v144_v16 }
  0xef   :  { %v874_v18 = vmul.f32 -1.442695, %v230_v17 }
  0xf1   :  { %1044 = vpow2.f32 %v874_v18 }
  0xfe   :  { %v1045_v19 = vpop.eup %1044 }
  0xff   :  { %v234_v20 = vadd.f32 1.0, %v1045_v19 }
 0x101   :  { %1046 = vrcp.f32 %v234_v20 }
 0x10e   :  { %v1047_v21 = vpop.eup %1046 }
 0x10f   :  { %v248_v33 = vsub.f32 1.0, %v1047_v21 }
 0x15f   :  { %v239_v22 = vpop.permute.xlu0 %238 }
 0x160   :  { %v241_v23 = vmul.f32 %v1047_v21, %v239_v22 }
 0x162   :  { %243 = vrot.lane.b32.xlu0 %v241_v23, %s1172_s1 }
 0x1d4   :  { %v244_v24 = vpop.permute.xlu0 %243 }
 0x1d5   :  { %v246_v25 = vadd.f32 %v244_v24, %v144_v16 }
 0x1d7   :  { %1048 = vtanh.f32 %v246_v25 }
 0x1e4   :  { %v1049_v29 = vpop.eup %1048 }
 0x1e5   :  { %250 = vrot.lane.b32.xlu1 %v1049_v29, %s1173_s24 }
 0x1e9   :  { %254 = vrot.lane.b32.xlu1 %v63_v8, %s1174_s2  ;;  %v622_v8 = vmul.u32 8, %v356_v48 }
 0x1eb   :  { %vm1343_vm13 = vcmp.ge.s32.totalorder %v359_v46, %v622_v8  ;;  %v735_v46 = vld [vmem:[%s1425_s7] sm:$0xff] }
 0x1ec   :  { %vm627_vm15 = vmand %vm1343_vm13, %vm626_vm14 }
 0x257   :  { %v251_v32 = vpop.permute.xlu1 %250 }
 0x258   :  { %v253_v35 = vmul.f32 %v251_v32, %v248_v33  ;;  %v747_v33 = vld [vmem:[%s1425_s7 + $0x60] sm:$0x1] }
 0x25b   :  { %v255_v34 = vpop.permute.xlu1 %254 }
 0x25c   :  { %v257_v36 = vmul.f32 %v1047_v21, %v255_v34  ;;  %v746_v34 = vld [vmem:[%s1425_s7 + $0x58] sm:$0xff] }
 0x25e   :  { %v258_v37 = vadd.f32 %v257_v36, %v253_v35  ;;  %v745_v35 = vld [vmem:[%s1425_s7 + $0x50] sm:$0xff]  ;;  %v744_v36 = vld [vmem:[%s1425_s7 + $0x48] sm:$0xff] }
 0x260   :  { %260 = vrot.lane.b32.xlu0 %v258_v37, %s1173_s24  ;;  %v743_v37 = vld [vmem:[%s1425_s7 + $0x40] sm:$0xff] }
 0x2d2   :  { %v1297_v38 = vpop.permute.xlu0 %260 }
 0x2d3   :  { %963 = vmatmul.mubr.msk.f32.vlgmr.msra.gmra.mxu0 %vm156_vm2, %v1297_v38  ;;  %264 = vst.msk [vmem:[#allocation8] sm:$0x3] %vm263_vm3, %v1297_v38  ;;  %vm633_vm3 = vcmask 123904  }
 0x2d4   :  { %971 = vmatpush3.msra.mxu0 %v276_v31  ;;  %986 = vmatprep.mubr.msk.f32.mxu0 %vm459_vm4, %v64_v53 }
 0x2d5   :  { %972 = vmatprep.subr.mxu0 %v275_v39 }
 0x2d6   :  { %973 = vmatpush3.msra.mxu0 %v275_v39  ;;  %v742_v39 = vld [vmem:[%s1425_s7 + $0x38] sm:$0xff] }
 0x2d7   :  { %974 = vmatprep.subr.mxu0 %v274_v40 }
 0x2d8   :  { %975 = vmatpush3.msra.mxu0 %v274_v40  ;;  %v741_v40 = vld [vmem:[%s1425_s7 + $0x30] sm:$0xff] }
 0x2d9   :  { %976 = vmatprep.subr.mxu0 %v273_v41 }
 0x2da   :  { %977 = vmatpush3.msra.mxu0 %v273_v41  ;;  %v740_v41 = vld [vmem:[%s1425_s7 + $0x28] sm:$0xff] }
 0x2db   :  { %978 = vmatprep.subr.mxu0 %v272_v42 }
 0x2dc   :  { %979 = vmatpush3.msra.mxu0 %v272_v42  ;;  %v739_v42 = vld [vmem:[%s1425_s7 + $0x20] sm:$0xff] }
 0x2dd   :  { %980 = vmatprep.subr.mxu0 %v271_v43 }
 0x2de   :  { %981 = vmatpush3.msra.mxu0 %v271_v43  ;;  %v738_v43 = vld [vmem:[%s1425_s7 + $0x18] sm:$0xff] }
 0x2df   :  { %982 = vmatprep.subr.mxu0 %v270_v44 }
 0x2e0   :  { %983 = vmatpush3.msra.mxu0 %v270_v44  ;;  %v737_v44 = vld [vmem:[%s1425_s7 + $0x10] sm:$0xff] }
 0x2e1   :  { %984 = vmatprep.subr.mxu0 %v269_v51 }
 0x2e2   :  { %985 = vmatpush3.msra.mxu0 %v269_v51 }
 0x2e3   :  { %987 = vmatmul.mubr.msk.f32.vlgmr.msra.gmra.mxu0 %vm459_vm4, %v65_v54  ;;  %vm653_vm4 = vcmask 122880  }
 0x393   :  { %v351_v57 = vpop.f32.mrf.mxu0 }
 0x394   :  { %v352_v58 = vadd.f32 %v875_v56, %v351_v57 }
 0x395   :  { %v964_v59 = vpop.f32.mrf.mxu0 }
 0x396   :  { %965 = vmatprep.subr.msk.mxu1 %vm380_vm12, %v352_v58 }
 0x397   :  { %966 = vmatpush3.msk.msra.mxu1 %vm380_vm12, %v352_v58 }
 0x398   :  { %968 = vmatmul.mubr.msk.f32.vlgmr.msra.gmra.mxu1 %vm373_vm10, %v878_v60  ;;  %989 = vmatprep.subr.mxu1 %v1170_v0 }
 0x399   :  { %993 = vmatprep.mubr.msk.f32.mxu1 %vm1171_vm0, %v1170_v0 }
 0x3a3   :  { %v988_v61 = vpop.f32.mrf.mxu0 }
 0x3a5   :  { %v532_v1 = vpop.f32.mrf.mxu0 }
 0x458   :  { %v969_v62 = vpop.f32.mrf.mxu1 }
 0x459   :  { %v538_v63 = vadd.f32 %v988_v61, %v969_v62 }
 0x45a   :  { %v450_v2 = vpop.f32.mrf.mxu1 }
 0x45b   :  { %1050 = vtanh.f32 %v538_v63  ;;  %v533_v3 = vadd.f32 %v532_v1, %v450_v2 }
 0x45d   :  { %1052 = vtanh.f32 %v533_v3 }
 0x468   :  { %v1051_v4 = vpop.eup %1050 }
 0x469   :  { %990 = vmatpush3.xpose.msk.msra.mxu1 %vm156_vm2, %v1051_v4 }
 0x46a   :  { %991 = vmatprep.subr.mxu1 %v1170_v0  ;;  %v1053_v5 = vpop.eup %1052 }
 0x46d   :  { %992 = vmatpush3.xpose.msk.msra.mxu1 %vm156_vm2, %v1053_v5 }
 0x46e   :  { %996 = vmatprep.subr.mxu1 %v1170_v0 }
 0x470   :  { %994 = vmatmul.mubr.msk.f32.vlgmr.msra.gmra.mxu1 %vm156_vm2, %v278_v6 }
 0x471   :  { %997 = vmatpush3.msra.mxu1 %v65_v54  ;;  %1000 = vmatprep.mubr.msk.f32.mxu1 %vm1171_vm0, %v1170_v0 }
 0x472   :  { %998 = vmatprep.subr.mxu1 %v1170_v0 }
 0x473   :  { %999 = vmatpush3.msra.mxu1 %v64_v53 }
 0x474   :  { %1003 = vmatprep.subr.mxu1 %v1170_v0 }
 0x530   :  { %v618_v12 = vpop.f32.mrf.mxu1 }
 0x531   :  { %v631_v13 = vrot.slane %v618_v12, %v630_v10 }
 0x532   :  { %v995_v14 = vpop.f32.mrf.mxu1 }
 0x533   :  { %v632_v15 = vsel %vm627_vm15, %v631_v13, -inf }
 0x534   :  { %v634_v16 = vsel %vm633_vm3, %v632_v15, -inf }
 0x535   :  { %635 = vmax.xlane.f32.xlu1 %v634_v16 }
 0x5be   :  { %v636_v17 = vpop.xlane.xlu1 %635 }
 0x5bf   :  { %v637_v18 = vsub.f32 %v631_v13, %v636_v17 }
 0x5c1   :  { %v638_v19 = vmul.f32 1.442695, %v637_v18 }
 0x5c3   :  { %1054 = vpow2.f32 %v638_v19 }
 0x5d0   :  { %v1055_v20 = vpop.eup %1054 }
 0x5d1   :  { %v640_v21 = vsel %vm627_vm15, %v1055_v20, 0.0 }
 0x5d2   :  { %v641_v22 = vsel %vm633_vm3, %v640_v21, 0.0 }
 0x5d3   :  { %642 = vadd.xlane.f32.xlu0 %v641_v22 }
 0x65c   :  { %v643_v23 = vpop.xlane.xlu0 %642 }
 0x65d   :  { %1056 = vrcp.f32 %v643_v23 }
 0x66a   :  { %v1057_v24 = vpop.eup %1056 }
 0x66b   :  { %v645_v25 = vmul.f32 %v1057_v24, %v640_v21 }
 0x66d   :  { %1001 = vmatmul.mubr.msk.f32.vlgmr.msra.gmra.mxu1 %vm73_vm1, %v645_v25  ;;  %v646_v26 = vsel %vm633_vm3, %v645_v25, 0.0  ;;  %vm748_vm1 = vcmask 793600  }
 0x66e   :  { %1029 = vmatprep.mubr.msk.f32.mxu1 %vm1171_vm0, %v1170_v0  ;;  %v647_v27 = vrot.slane %v646_v26, 4  ;;  %1004 = vmatpush3.msk.msra.mxu1 %vm752_vm5, %v747_v33  ;;  %vm733_vm0 = vcmask 785408  }
 0x66f   :  { %1005 = vmatprep.subr.mxu1 %v1170_v0 }
 0x670   :  { %v648_v28 = vadd.f32 %v647_v27, %v646_v26  ;;  %1006 = vmatpush3.msra.mxu1 %v746_v34 }
 0x671   :  { %1007 = vmatprep.subr.mxu1 %v1170_v0 }
 0x672   :  { %v649_v29 = vrot.slane %v648_v28, 2  ;;  %1008 = vmatpush3.msra.mxu1 %v745_v35 }
 0x673   :  { %1009 = vmatprep.subr.mxu1 %v1170_v0 }
 0x674   :  { %v650_v30 = vadd.f32 %v649_v29, %v648_v28  ;;  %1010 = vmatpush3.msra.mxu1 %v744_v36 }
 0x675   :  { %1011 = vmatprep.subr.mxu1 %v1170_v0 }
 0x676   :  { %v651_v31 = vrot.slane %v650_v30, 1  ;;  %1012 = vmatpush3.msra.mxu1 %v743_v37 }
 0x677   :  { %1013 = vmatprep.subr.mxu1 %v1170_v0 }
 0x678   :  { %v652_v32 = vadd.f32 %v651_v31, %v650_v30  ;;  %1014 = vmatpush3.msra.mxu1 %v742_v39 }
 0x679   :  { %1015 = vmatprep.subr.mxu1 %v1170_v0 }
 0x67a   :  { %654 = vst.msk [vmem:[#allocation10] sm:$0x1] %vm653_vm4, %v652_v32  ;;  %1016 = vmatpush3.msra.mxu1 %v741_v40 }
 0x67b   :  { %1017 = vmatprep.subr.mxu1 %v1170_v0 }
 0x67c   :  { %1018 = vmatpush3.msra.mxu1 %v740_v41 }
 0x67d   :  { %1019 = vmatprep.subr.mxu1 %v1170_v0 }
 0x67e   :  { %1020 = vmatpush3.msra.mxu1 %v739_v42 }
 0x67f   :  { %1021 = vmatprep.subr.mxu1 %v1170_v0 }
 0x680   :  { %1022 = vmatpush3.msra.mxu1 %v738_v43 }
 0x681   :  { %1023 = vmatprep.subr.mxu1 %v1170_v0 }
 0x682   :  { %1024 = vmatpush3.msra.mxu1 %v737_v44 }
 0x683   :  { %1025 = vmatprep.subr.mxu1 %v1170_v0 }
 0x684   :  { %1026 = vmatpush3.msra.mxu1 %v736_v45 }
 0x685   :  { %1027 = vmatprep.subr.mxu1 %v1170_v0 }
 0x686   :  { %1028 = vmatpush3.msra.mxu1 %v735_v46 }
 0x72d   :  { %v724_v47 = vpop.f32.mrf.mxu1 }
 0x72e   :  { %729 = vrot.lane.b32.xlu0 %v724_v47, %s1174_s2 }
 0x72f   :  { %v1002_v48 = vpop.f32.mrf.mxu1 }
 0x7a0   :  { %v730_v49 = vpop.permute.xlu0 %729 }
 0x7a1   :  { %v732_v50 = vsel %vm156_vm2, %v1297_v38, %v730_v49 }
 0x7a2   :  { %v734_v51 = vsel %vm733_vm0, %v732_v50, 1.0 }
 0x7a3   :  { %1030 = vmatmul.mubr.msk.f32.vlgmr.msra.gmra.mxu1 %vm748_vm1, %v734_v51 }
 0x7a4   :  { %1109 = shalt.err (!%p1106_p0)
}
 0x7a5   :  { %846 = dma.vmem_to_hbm [thread:$0]  %s844_s20, 32, %s1427_s9, [#allocation9]  }
 0x7a6   :  { %s1176_s22 = smov [#allocation10]  }
 0x7a7   :  { %s853_s23 = sshll.u32 %s1176_s22, 4  ;;  %s854_s23 = int_to_ptr.vmem [resolvable:$true] %s853_s23 }
 0x7a8   :  { %s1118_s24 = scalar_lea.vmem %s854_s23, 16  ;;  %s1122_s25 = scalar_lea.vmem %s854_s23, 32 }
 0x7a9   :  { %p1119_p1 = scmp.ne.s32.totalorder %s854_s23, %s1118_s24  ;;  %p1123_p2 = scmp.lt.s32.totalorder %s854_s23, %s854_s23 }
 0x7aa   :  { %p1124_p3 = scmp.lt.s32.totalorder %s1122_s25, %s1118_s24 }
 0x7ac   :  { %p1125_p4 = por %p1124_p3, %p1123_p2 }
 0x7ae   :  { %p1126_p5 = pnand %p1125_p4, %p1119_p1 }
 0x7b0   :  { %1129 = shalt.err (!%p1126_p5)
}
 0x7b1   :  { %856 = dma.vmem_to_hbm [thread:$0]  %s854_s23, 16, %s1428_s10, [#allocation9]  }
 0x7b2   :  { %s1177_s27 = smov [#allocation7]  }
 0x7b3   :  { %s833_s28 = sshll.u32 %s1177_s27, 4  ;;  %s834_s28 = int_to_ptr.vmem [resolvable:$true] %s833_s28 }
 0x7b4   :  { %s1138_s9 = scalar_lea.vmem %s834_s28, 32  ;;  %p1143_p7 = scmp.lt.s32.totalorder %s834_s28, %s834_s28 }
 0x7b5   :  { %p1139_p6 = scmp.ne.s32.totalorder %s834_s28, %s1138_s9  ;;  %p1144_p8 = scmp.lt.s32.totalorder %s1138_s9, %s1138_s9 }
 0x7b7   :  { %p1145_p9 = por %p1144_p8, %p1143_p7 }
 0x7b9   :  { %p1146_p10 = pnand %p1145_p9, %p1139_p6 }
 0x863   :  { %v822_v0 = vpop.f32.mrf.mxu1 }
 0x864   :  { %826 = vst [vmem:[#allocation7] sm:$0x3] %v822_v0 }
 0x865   :  { %v1031_v38 = vpop.f32.mrf.mxu1 }
 0x866   :  { %1149 = shalt.err (!%p1146_p10)
}
 0x867   :  { %836 = dma.vmem_to_hbm [thread:$0]  %s834_s28, 32, %s1426_s8, [#allocation4]  }
 0x868   :  { %1162 = dma.done.wait [#allocation4], 32  }
 0x869   :  { %1163 = vsyncadd [#allocation4], 4294967264 }
 0x86a   :  { %1164 = dma.done.wait [#allocation9], 48  }
 0x86b   :  { %1165 = vsyncadd [#allocation9], 4294967248 }
 0x86c   :  { %866 = vsyncpa [#allocation3], 1 }
 0x86d   :  { %867 = vsyncpa [#allocation6], 1 }
 0x86e   :  { %868 = vsyncpa [#allocation4], 1 }
 0x86f   :  { %869 = vsyncpa [#allocation9], 1 }

</bundles_post_ra>
